<compile_context>
chip_gen: v5e
topology: v5e:2x2
jax: 0.10.0
libtpu: 0.0.40
codegen_flags: <defaults>
</compile_context>

<pallas_src>
from functools import partial

import jax
import jax.numpy as jnp
from jax.experimental import pallas as pl
from jax.experimental.pallas import tpu as pltpu

EPS = 1e-6


# --------------------------------------------------------------------------
# Kernels
# --------------------------------------------------------------------------
def _proj_kernel(x_ref, w_ref, b_ref, nw_ref, o_ref, *scratch,
                 apply_norm, scale, single_k):
    # x: (1, tm, tk) bf16, w: (tk, Dout) bf16, b/nw: (1, Dout) f32.
    # y = x @ w + b, optional full-dim RMSNorm, optional softmax-scale fold.
    def epilogue(y):
        y = y + b_ref[...]
        if apply_norm:
            ms = jnp.mean(y * y, axis=-1, keepdims=True)
            y = y * jax.lax.rsqrt(ms + EPS) * nw_ref[...]
        if scale != 1.0:
            y = y * scale
        return y.astype(o_ref.dtype)

    if single_k:
        y = jnp.dot(x_ref[0], w_ref[...], preferred_element_type=jnp.float32)
        o_ref[0] = epilogue(y)
        return

    (acc_ref,) = scratch
    kk = pl.program_id(2)

    @pl.when(kk == 0)
    def _():
        acc_ref[...] = jnp.zeros_like(acc_ref)

    acc_ref[...] += jnp.dot(x_ref[0], w_ref[...],
                            preferred_element_type=jnp.float32)

    @pl.when(kk == pl.num_programs(2) - 1)
    def _():
        o_ref[0] = epilogue(acc_ref[...])


def _kv_proj_kernel(c_ref, wk_ref, bk_ref, wv_ref, bv_ref, nk_ref,
                    k_out_ref, v_out_ref, *scratch, apply_norm, single_k):
    # Shared context tile -> k and v projections (k optionally RMSNorm'd).
    def k_epilogue(acc):
        y = acc + bk_ref[...]
        if apply_norm:
            ms = jnp.mean(y * y, axis=-1, keepdims=True)
            y = y * jax.lax.rsqrt(ms + EPS) * nk_ref[...]
        return y.astype(k_out_ref.dtype)

    if single_k:
        c = c_ref[0]
        k_out_ref[0] = k_epilogue(
            jnp.dot(c, wk_ref[...], preferred_element_type=jnp.float32))
        v_out_ref[0] = (jnp.dot(c, wv_ref[...],
                                preferred_element_type=jnp.float32)
                        + bv_ref[...]).astype(v_out_ref.dtype)
        return

    acc_k, acc_v = scratch
    kk = pl.program_id(2)

    @pl.when(kk == 0)
    def _():
        acc_k[...] = jnp.zeros_like(acc_k)
        acc_v[...] = jnp.zeros_like(acc_v)

    c = c_ref[0]
    acc_k[...] += jnp.dot(c, wk_ref[...], preferred_element_type=jnp.float32)
    acc_v[...] += jnp.dot(c, wv_ref[...], preferred_element_type=jnp.float32)

    @pl.when(kk == pl.num_programs(2) - 1)
    def _():
        k_out_ref[0] = k_epilogue(acc_k[...])
        v_out_ref[0] = (acc_v[...] + bv_ref[...]).astype(v_out_ref.dtype)


def _flash_attn_kernel(q_ref, k_ref, v_ref, o_ref, m_sc, l_sc, acc_sc,
                       *, heads_per_block, head_dim):
    # q: (1, tq, gw), k/v: (1, tkv, gw) bf16, gw = heads_per_block * head_dim.
    # Softmax scale is already folded into q by the q-projection epilogue.
    ki = pl.program_id(3)

    @pl.when(ki == 0)
    def _():
        m_sc[...] = jnp.full(m_sc.shape, -jnp.inf, dtype=jnp.float32)
        l_sc[...] = jnp.zeros_like(l_sc)
        acc_sc[...] = jnp.zeros_like(acc_sc)

    q = q_ref[0]                                            # (tq, gw) bf16
    k = k_ref[0]                                            # (tkv, gw) bf16
    v = v_ref[0]                                            # (tkv, gw) bf16
    tq = q.shape[0]
    hd = head_dim
    g = heads_per_block

    if g == 1:
        # s = q @ k^T without materializing a transpose (contract last dims).
        s = jax.lax.dot_general(q, k, (((1,), (1,)), ((), ())),
                                preferred_element_type=jnp.float32)
        m_prev = m_sc[0]                                    # (tq, 1)
        m_new = jnp.maximum(m_prev, s.max(axis=-1, keepdims=True))
        alpha = jnp.exp(m_prev - m_new)
        p = jnp.exp(s - m_new)
        l_sc[0] = alpha * l_sc[0] + p.sum(axis=-1, keepdims=True)
        acc_sc[...] = alpha * acc_sc[...] + jnp.dot(
            p.astype(v.dtype), v, preferred_element_type=jnp.float32)
        m_sc[0] = m_new
    else:
        # Small static loop over heads in the group (lane-dense accumulator).
        alphas, pvs = [], []
        for h in range(g):
            qh = q[:, h * hd:(h + 1) * hd]
            kh = k[:, h * hd:(h + 1) * hd]
            vh = v[:, h * hd:(h + 1) * hd]
            s = jax.lax.dot_general(qh, kh, (((1,), (1,)), ((), ())),
                                    preferred_element_type=jnp.float32)
            m_prev = m_sc[h]
            m_new = jnp.maximum(m_prev, s.max(axis=-1, keepdims=True))
            alpha = jnp.exp(m_prev - m_new)
            p = jnp.exp(s - m_new)
            l_sc[h] = alpha * l_sc[h] + p.sum(axis=-1, keepdims=True)
            m_sc[h] = m_new
            alphas.append(jnp.broadcast_to(alpha, (tq, hd)))
            pvs.append(jnp.dot(p.astype(vh.dtype), vh,
                               preferred_element_type=jnp.float32))
        alpha_full = jnp.concatenate(alphas, axis=-1)       # (tq, gw)
        pv_full = jnp.concatenate(pvs, axis=-1)             # (tq, gw)
        acc_sc[...] = alpha_full * acc_sc[...] + pv_full

    @pl.when(ki == pl.num_programs(3) - 1)
    def _():
        if g == 1:
            inv = pl.reciprocal(l_sc[0], approx=True)       # (tq, 1)
            o_ref[0] = (acc_sc[...] * inv).astype(o_ref.dtype)
        else:
            invs = [jnp.broadcast_to(pl.reciprocal(l_sc[h], approx=True),
                                     (tq, hd)) for h in range(g)]
            inv_full = jnp.concatenate(invs, axis=-1)       # (tq, gw)
            o_ref[0] = (acc_sc[...] * inv_full).astype(o_ref.dtype)


# --------------------------------------------------------------------------
# Tiling / compiler-params helpers
# --------------------------------------------------------------------------
def _row_tile(n, block_rows=None):
    if block_rows is not None and n % block_rows == 0:
        return block_rows
    if n <= 512:
        return n
    for t in (512, 256, 128, 64, 32, 16):
        if n % t == 0:
            return t
    return n


def _k_tile(n, max_k_tile=None):
    # Prefer the full contraction dim (weight stays VMEM-resident and the
    # single-K fast path kicks in); otherwise 128-multiple blocks.
    cap = 512 if max_k_tile is None else max_k_tile
    if n <= cap:
        return n
    for t in (512, 256, 128):
        if t <= cap and n % t == 0:
            return t
    return n


def _heads_per_block(num_heads, head_dim):
    # Smallest head group whose lane width is a 128-multiple (e.g. hd=64 -> 2).
    for g in range(1, num_heads + 1):
        if num_heads % g == 0 and (g * head_dim) % 128 == 0:
            return g
    return num_heads   # fall back to full-D block (always a legal block shape)


def _mk_params(semantics, est_bytes):
    # Explicit VMEM budget; capped at 64 MiB so the same tiling stays valid on
    # v7x (64 MiB physical) while still raising the 16/32 MiB scoped defaults.
    limit = int(min(max(2 * est_bytes, 32 * 1024 * 1024), 64 * 1024 * 1024))
    return pltpu.CompilerParams(dimension_semantics=semantics,
                                vmem_limit_bytes=limit)


# --------------------------------------------------------------------------
# Wrappers
# --------------------------------------------------------------------------
def linear_proj(x, w, b, norm_w=None, *, scale=1.0, out_dtype=jnp.bfloat16,
                block_rows=None, max_k_tile=None):
    """y = (RMSNorm?)(x @ w + b) * scale.  w is pre-transposed (Din, Dout) bf16."""
    B, L, Din = x.shape
    Dout = w.shape[1]
    apply_norm = norm_w is not None
    if norm_w is None:
        norm_w = jnp.ones((Dout,), jnp.float32)
    tm = _row_tile(L, block_rows)
    tk = _k_tile(Din, max_k_tile)
    assert L % tm == 0 and Din % tk == 0
    n_k = Din // tk
    single_k = n_k == 1
    grid = (B, L // tm, n_k)

    out_isz = jnp.dtype(out_dtype).itemsize
    est = ((tm * tk * 2 + tk * Dout * 2 + tm * Dout * out_isz) * 2
           + (0 if single_k else tm * Dout * 4) + 4 * Dout * 4)
    cost = pl.CostEstimate(
        flops=2 * B * L * Din * Dout, transcendentals=0,
        bytes_accessed=int(x.size * x.dtype.itemsize + w.size * 2
                           + B * L * Dout * out_isz))

    return pl.pallas_call(
        partial(_proj_kernel, apply_norm=apply_norm, scale=float(scale),
                single_k=single_k),
        out_shape=jax.ShapeDtypeStruct((B, L, Dout), out_dtype),
        grid=grid,
        in_specs=[
            pl.BlockSpec((1, tm, tk), lambda bb, i, kk: (bb, i, kk)),
            pl.BlockSpec((tk, Dout), lambda bb, i, kk: (kk, 0)),
            pl.BlockSpec((1, Dout), lambda bb, i, kk: (0, 0)),
            pl.BlockSpec((1, Dout), lambda bb, i, kk: (0, 0)),
        ],
        out_specs=pl.BlockSpec((1, tm, Dout), lambda bb, i, kk: (bb, i, 0)),
        scratch_shapes=([] if single_k
                        else [pltpu.VMEM((tm, Dout), jnp.float32)]),
        compiler_params=_mk_params(("parallel", "parallel", "arbitrary"), est),
        cost_estimate=cost,
    )(x, w, b.reshape(1, Dout), norm_w.reshape(1, Dout))


def kv_proj(context, wk, bk, wv, bv, norm_k_w=None, *,
            out_dtype=jnp.bfloat16, block_rows=None, max_k_tile=None):
    """k = RMSNorm?(ctx @ wk + bk), v = ctx @ wv + bv, fused (context loaded once)."""
    B, Lc, Dc = context.shape
    Dout = wk.shape[1]
    apply_norm = norm_k_w is not None
    if norm_k_w is None:
        norm_k_w = jnp.ones((Dout,), jnp.float32)
    tm = _row_tile(Lc, block_rows)
    tk = _k_tile(Dc, max_k_tile)
    assert Lc % tm == 0 and Dc % tk == 0
    n_k = Dc // tk
    single_k = n_k == 1
    grid = (B, Lc // tm, n_k)

    out_isz = jnp.dtype(out_dtype).itemsize
    est = ((tm * tk * 2 + 2 * tk * Dout * 2 + 2 * tm * Dout * out_isz) * 2
           + (0 if single_k else 2 * tm * Dout * 4) + 6 * Dout * 4)
    cost = pl.CostEstimate(
        flops=4 * B * Lc * Dc * Dout, transcendentals=0,
        bytes_accessed=int(context.size * context.dtype.itemsize
                           + (wk.size + wv.size) * 2
                           + 2 * B * Lc * Dout * out_isz))

    out_spec = pl.BlockSpec((1, tm, Dout), lambda bb, i, kk: (bb, i, 0))
    return pl.pallas_call(
        partial(_kv_proj_kernel, apply_norm=apply_norm, single_k=single_k),
        out_shape=(jax.ShapeDtypeStruct((B, Lc, Dout), out_dtype),
                   jax.ShapeDtypeStruct((B, Lc, Dout), out_dtype)),
        grid=grid,
        in_specs=[
            pl.BlockSpec((1, tm, tk), lambda bb, i, kk: (bb, i, kk)),
            pl.BlockSpec((tk, Dout), lambda bb, i, kk: (kk, 0)),
            pl.BlockSpec((1, Dout), lambda bb, i, kk: (0, 0)),
            pl.BlockSpec((tk, Dout), lambda bb, i, kk: (kk, 0)),
            pl.BlockSpec((1, Dout), lambda bb, i, kk: (0, 0)),
            pl.BlockSpec((1, Dout), lambda bb, i, kk: (0, 0)),
        ],
        out_specs=(out_spec, out_spec),
        scratch_shapes=([] if single_k
                        else [pltpu.VMEM((tm, Dout), jnp.float32),
                              pltpu.VMEM((tm, Dout), jnp.float32)]),
        compiler_params=_mk_params(("parallel", "parallel", "arbitrary"), est),
        cost_estimate=cost,
    )(context, wk, bk.reshape(1, Dout), wv, bv.reshape(1, Dout),
      norm_k_w.reshape(1, Dout))


def flash_attention(q, k, v, num_heads, *, block_rows=None):
    """Flash-style multi-head attention.  Heads are a grid axis (no in-kernel
    reshape/transpose); the softmax scale is already folded into q."""
    B, Lq, D = q.shape
    Lk = k.shape[1]
    hd = D // num_heads
    g = _heads_per_block(num_heads, hd)
    gw = g * hd
    n_hb = num_heads // g
    tq = _row_tile(Lq, block_rows)
    tkv = _row_tile(Lk, block_rows)
    assert Lq % tq == 0 and Lk % tkv == 0
    grid = (B, n_hb, Lq // tq, Lk // tkv)

    est = ((tq * gw * 2 + 2 * tkv * gw * 2 + tq * gw * 2) * 2
           + tq * gw * 4 + 2 * g * tq * 4 * 128)
    cost = pl.CostEstimate(
        flops=4 * B * num_heads * Lq * Lk * hd,
        transcendentals=B * num_heads * Lq * Lk,
        bytes_accessed=int(q.size * 2 + (k.size + v.size) * 2 + q.size * 2))

    return pl.pallas_call(
        partial(_flash_attn_kernel, heads_per_block=g, head_dim=hd),
        out_shape=jax.ShapeDtypeStruct((B, Lq, D), q.dtype),
        grid=grid,
        in_specs=[
            pl.BlockSpec((1, tq, gw), lambda bb, hg, qi, ki: (bb, qi, hg)),
            pl.BlockSpec((1, tkv, gw), lambda bb, hg, qi, ki: (bb, ki, hg)),
            pl.BlockSpec((1, tkv, gw), lambda bb, hg, qi, ki: (bb, ki, hg)),
        ],
        out_specs=pl.BlockSpec((1, tq, gw), lambda bb, hg, qi, ki: (bb, qi, hg)),
        scratch_shapes=[
            pltpu.VMEM((g, tq, 1), jnp.float32),    # running max (per head)
            pltpu.VMEM((g, tq, 1), jnp.float32),    # running sum (per head)
            pltpu.VMEM((tq, gw), jnp.float32),      # lane-dense output acc
        ],
        compiler_params=_mk_params(
            ("parallel", "parallel", "parallel", "arbitrary"), est),
        cost_estimate=cost,
    )(q, k, v)


# --------------------------------------------------------------------------
# CrossAttention forward (Pallas-backed)
# --------------------------------------------------------------------------
def cross_attention(params, x, context, num_heads, qk_norm=False, *,
                    block_rows=None, max_k_tile=None):
    B, L, D = x.shape
    hd = D // num_heads
    scale = hd ** -0.5

    # One-time bf16 cast of activations (halves HBM traffic into the kernels).
    xb = x.astype(jnp.bfloat16)
    cb = context.astype(jnp.bfloat16)

    # Softmax scale is folded into q *after* the optional RMSNorm (equivalent
    # to scaling the scores, as the reference does).
    q = linear_proj(xb, params["wq"], params["bq"],
                    params["nq"] if qk_norm else None, scale=scale,
                    block_rows=block_rows, max_k_tile=max_k_tile)
    k, v = kv_proj(cb, params["wk"], params["bk"],
                   params["wv"], params["bv"],
                   params["nk"] if qk_norm else None,
                   block_rows=block_rows, max_k_tile=max_k_tile)
    o = flash_attention(q, k, v, num_heads, block_rows=block_rows)
    return linear_proj(o, params["wo"], params["bo"], None,
                       out_dtype=jnp.float32, block_rows=block_rows,
                       max_k_tile=max_k_tile)


# --------------------------------------------------------------------------
# Pure-JAX f32 reference (mirrors the PyTorch module)
# --------------------------------------------------------------------------
def _rmsnorm_ref(x, w):
    return x * jax.lax.rsqrt(jnp.mean(x * x, axis=-1, keepdims=True) + EPS) * w


def cross_attention_ref(p, x, context, H, qk_norm=False):
    B, L, D = x.shape
    Lc = context.shape[1]
    hd = D // H
    q = x @ p["wq"] + p["bq"]
    k = context @ p["wk"] + p["bk"]
    v = context @ p["wv"] + p["bv"]
    if qk_norm:
        q = _rmsnorm_ref(q, p["nq"])
        k = _rmsnorm_ref(k, p["nk"])
    q = q.reshape(B, L, H, hd).transpose(0, 2, 1, 3)
    k = k.reshape(B, Lc, H, hd).transpose(0, 2, 1, 3)
    v = v.reshape(B, Lc, H, hd).transpose(0, 2, 1, 3)
    s = jnp.einsum("bhqd,bhkd->bhqk", q, k) * (hd ** -0.5)
    a = jax.nn.softmax(s, axis=-1)
    o = jnp.einsum("bhqk,bhkd->bhqd", a, v)
    o = o.transpose(0, 2, 1, 3).reshape(B, L, D)
    return o @ p["wo"] + p["bo"]


# --------------------------------------------------------------------------
# Params
# --------------------------------------------------------------------------
def init_params(key, dim, context_dim):
    # Weights are stored ALREADY pre-transposed as (Din, Dout) — the one-time
    # transpose happens at parameter-load time, never at call time.
    ks = jax.random.split(key, 10)

    def w(k, din, dout):
        return 0.02 * jax.random.normal(k, (din, dout), jnp.float32)

    def b(k, d):
        return 0.01 * jax.random.normal(k, (d,), jnp.float32)

    return {
        "wq": w(ks[0], dim, dim),          "bq": b(ks[1], dim),
        "wk": w(ks[2], context_dim, dim),  "bk": b(ks[3], dim),
        "wv": w(ks[4], context_dim, dim),  "bv": b(ks[5], dim),
        "wo": w(ks[6], dim, dim),          "bo": b(ks[7], dim),
        "nq": 1.0 + 0.1 * jax.random.normal(ks[8], (dim,), jnp.float32),
        "nk": 1.0 + 0.1 * jax.random.normal(ks[9], (dim,), jnp.float32),
    }


def prepare_params(p):
    # One-time bf16 cast of matmul weights for the MXU (f32 accumulation in
    # kernel); biases and norm weights stay f32 for the f32 epilogues.
    # TODO(synk): optional fp8 (v7x) / int8 (v5e/v6e) weight-only quantization.
    out = dict(p)
    for name in ("wq", "wk", "wv", "wo"):
        out[name] = p[name].astype(jnp.bfloat16)
    return out


# --------------------------------------------------------------------------
# Driver
# --------------------------------------------------------------------------
if __name__ == "__main__":
    B, L, Lc = 2, 128, 256
    D, Dctx = 256, 256

    key = jax.random.PRNGKey(0)
    kx, kc, kp = jax.random.split(key, 3)
    x = jax.random.normal(kx, (B, L, D), jnp.float32)
    context = jax.random.normal(kc, (B, Lc, Dctx), jnp.float32)

    params_f32 = init_params(kp, D, Dctx)
    params = prepare_params(params_f32)

    # Three configs exercise: (1) per-head path + single-K fast paths,
    # (2) multi-K accumulator + multi-step online softmax + fused RMSNorm,
    # (3) head_dim=64 grouped-head (2 heads / 128 lanes) path.
    configs = [
        dict(H=2, qk_norm=False, block_rows=None, max_k_tile=None),
        dict(H=2, qk_norm=True,  block_rows=64,   max_k_tile=128),
        dict(H=4, qk_norm=True,  block_rows=64,   max_k_tile=None),
    ]

    for cfg in configs:
        out = jax.block_until_ready(
            cross_attention(params, x, context, cfg["H"], cfg["qk_norm"],
                            block_rows=cfg["block_rows"],
                            max_k_tile=cfg["max_k_tile"]))
        ref = cross_attention_ref(params_f32, x, context,
                                  cfg["H"], cfg["qk_norm"])
        assert out.shape == (B, L, D)
        max_err = float(jnp.max(jnp.abs(out - ref)))
        ref_scale = float(jnp.max(jnp.abs(ref)))
        assert max_err <= 5e-2 * max(ref_scale, 1e-3), (
            f"Pallas output mismatch ({cfg}): "
            f"max_err={max_err}, ref_scale={ref_scale}")

    print("KERNEL_OK")
</pallas_src>

<mosaic_0001>
module attributes {stable_mosaic.version = 11 : i64} {
  func.func @_proj_kernel(%arg0: i32, %arg1: i32, %arg2: i32, %arg3: memref<1x128x256xbf16, #tpu.memory_space<vmem>>, %arg4: memref<256x256xbf16, #tpu.memory_space<vmem>>, %arg5: memref<1x256xf32, #tpu.memory_space<vmem>>, %arg6: memref<1x256xf32, #tpu.memory_space<vmem>>, %arg7: memref<1x128x256xbf16, #tpu.memory_space<vmem>>) attributes {dimension_semantics = [#tpu.dimension_semantics<parallel>, #tpu.dimension_semantics<parallel>, #tpu.dimension_semantics<arbitrary>], iteration_bounds = array<i64: 2, 1, 1>, scalar_prefetch = 0 : i64, scratch_operands = 0 : i64, tpu.core_type = #tpu.core_type<tc>, window_params = [{transform_indices = @transform_0, window_bounds = array<i64: 1, 128, 256>}, {transform_indices = @transform_1, window_bounds = array<i64: 256, 256>}, {pipeline_mode = #tpu.pipeline_mode<synchronous>, transform_indices = @transform_2, window_bounds = array<i64: 1, 256>}, {pipeline_mode = #tpu.pipeline_mode<synchronous>, transform_indices = @transform_3, window_bounds = array<i64: 1, 256>}, {transform_indices = @transform_4, window_bounds = array<i64: 1, 128, 256>}]} {
    %c0 = arith.constant 0 : index
    %c0_0 = arith.constant 0 : index
    %c0_1 = arith.constant 0 : index
    %0 = vector.load %arg3[%c0, %c0_0, %c0_1] : memref<1x128x256xbf16, #tpu.memory_space<vmem>>, vector<1x128x256xbf16>
    %1 = vector.shape_cast %0 : vector<1x128x256xbf16> to vector<128x256xbf16>
    %c0_2 = arith.constant 0 : index
    %c0_3 = arith.constant 0 : index
    %2 = vector.load %arg4[%c0_2, %c0_3] : memref<256x256xbf16, #tpu.memory_space<vmem>>, vector<256x256xbf16>
    %cst = arith.constant dense<0.000000e+00> : vector<128x256xf32>
    %3 = tpu.matmul %1, %2, %cst {dimension_numbers = #tpu.dot_dimension_numbers<[1], [0], [0], [1], [0, 0, 1, 1], [], []>} : vector<128x256xbf16>, vector<256x256xbf16>, vector<128x256xf32> -> vector<128x256xf32>
    %c0_4 = arith.constant 0 : index
    %c0_5 = arith.constant 0 : index
    %4 = vector.load %arg5[%c0_4, %c0_5] : memref<1x256xf32, #tpu.memory_space<vmem>>, vector<1x256xf32>
    %5 = vector.broadcast %4 : vector<1x256xf32> to vector<128x256xf32>
    %6 = arith.addf %3, %5 : vector<128x256xf32>
    %cst_6 = arith.constant 0.0883883461 : f32
    %7 = vector.broadcast %cst_6 : f32 to vector<128x256xf32>
    %8 = arith.mulf %6, %7 : vector<128x256xf32>
    %9 = arith.truncf %8 : vector<128x256xf32> to vector<128x256xbf16>
    %c0_7 = arith.constant 0 : index
    %c0_8 = arith.constant 0 : index
    %c0_9 = arith.constant 0 : index
    %10 = vector.load %arg7[%c0_7, %c0_8, %c0_9] : memref<1x128x256xbf16, #tpu.memory_space<vmem>>, vector<1x128x256xbf16>
    %11 = vector.shape_cast %10 : vector<1x128x256xbf16> to vector<128x256xbf16>
    %12 = vector.shape_cast %9 : vector<128x256xbf16> to vector<1x128x256xbf16>
    tpu.vector_store %arg7[%c0_7, %c0_8, %c0_9], %12 {strides = array<i32>} : memref<1x128x256xbf16, #tpu.memory_space<vmem>>, vector<1x128x256xbf16>,
    return
  }
  func.func @transform_0(%arg0: i32, %arg1: i32, %arg2: i32) -> (i32, i32, i32) {
    %c0_i32 = arith.constant 0 : i32
    return %arg0, %arg1, %arg2 : i32, i32, i32
  }
  func.func @transform_1(%arg0: i32, %arg1: i32, %arg2: i32) -> (i32, i32) {
    %c0_i32 = arith.constant 0 : i32
    %c0_i32_0 = arith.constant 0 : i32
    return %arg2, %c0_i32 : i32, i32
  }
  func.func @transform_2(%arg0: i32, %arg1: i32, %arg2: i32) -> (i32, i32) {
    %c0_i32 = arith.constant 0 : i32
    %c0_i32_0 = arith.constant 0 : i32
    %c0_i32_1 = arith.constant 0 : i32
    return %c0_i32, %c0_i32_0 : i32, i32
  }
  func.func @transform_3(%arg0: i32, %arg1: i32, %arg2: i32) -> (i32, i32) {
    %c0_i32 = arith.constant 0 : i32
    %c0_i32_0 = arith.constant 0 : i32
    %c0_i32_1 = arith.constant 0 : i32
    return %c0_i32, %c0_i32_0 : i32, i32
  }
  func.func @transform_4(%arg0: i32, %arg1: i32, %arg2: i32) -> (i32, i32, i32) {
    %c0_i32 = arith.constant 0 : i32
    %c0_i32_0 = arith.constant 0 : i32
    return %arg0, %arg1, %c0_i32 : i32, i32, i32
  }
}

</mosaic_0001>

<bundles_post_ra>
// kernel: tpu_custom_call.1
= control target key start
LH: loop header
LB: loop body
LE: loop exit
PB: predicated region body
PF: predicated region fallthrough
CT: control target
= control target key end

     0   :  { %9 = vsyncpa [#allocation3], 0  ;;  %s1776_s0 = inlined_call_operand.hbm [shape: bf16[2,128,256], index: 0, kind: input, shape index: {}]   ;;  %s1777_s1 = inlined_call_operand.hbm [shape: bf16[256,256], index: 1, kind: input, shape index: {}]   ;;  %s1778_s2 = inlined_call_operand.hbm [shape: f32[1,256], index: 2, kind: input, shape index: {}]   ;;  %s1779_s3 = inlined_call_operand.vmem [shape: f32[1,256], index: 3, kind: input, shape index: {}]   ;;  %s1780_s4 = inlined_call_operand.hbm [shape: bf16[2,128,256], index: 4, kind: output, shape index: {}]  }
   0x1   :  { %11 = vsyncpa [#allocation3 + $0x1], 0 }
   0x2   :  { %12 = vsyncpa [#allocation6], 0 }
   0x3   :  { %13 = vsyncpa [#allocation4], 0 }
   0x4   :  { %15 = vsyncpa [#allocation4 + $0x1], 0  ;;  %s1535_s15 = smov 0   ;;  %s1537_s16 = smov 0  }
   0x5   :  { %s1539_s17 = smov 0   ;;  %s1541_s18 = smov 0  }
   0x6   :  { %s1543_s19 = smov 0   ;;  %s1545_s20 = smov 0  }
   0x7 LB: > { %s978_s3 = sadd.s32 4294967295, %s1502_s20   ;;  %s979_s21 = sadd.s32 4294967294, %s1502_s20   ;;  %s1502_s20 = sphi %s1545_s20, %s21_s20   ;;  %s1498_s19 = sphi %s1543_s19, %s1790_s19   ;;  %s1494_s18 = sphi %s1541_s18, %s1789_s18   ;;  %s1490_s17 = sphi %s1539_s17, %s1788_s17   ;;  %s1486_s16 = sphi %s1537_s16, %s1787_s16   ;;  %s1482_s15 = sphi %s1535_s15, %s1786_s15  }
   0x8   : > { %p64_p0 = scmp.ne.s32.totalorder %s1486_s16, %s1482_s15  ;;  %p1569_p1 = scmp.eq.s32.totalorder %s978_s3, 0 }
   0x9   : > { %p164_p2 = scmp.eq.s32.totalorder %s979_s21, 1  ;;  %p980_p4 = scmp.ge.s32.totalorder %s1502_s20, 1 }
   0xa   : > { %p1575_p3 = por %p1569_p1, %p64_p0  ;;  %p171_p6 = scmp.lt.s32.totalorder %s1502_s20, 3 }
   0xb   : > { %p1580_p5 = por %p164_p2, %p64_p0  ;;  %s186_s27 = sshll.u32 %s1777_s1, 4  ;;  %s187_s27 = int_to_ptr.hbm [resolvable:$true] %s186_s27 }
   0xc   : > { %p1588_p7 = pnand %p980_p4, %p171_p6  ;;  %s1504_s29 = smov [#allocation5]  }
   0xd   : > { %s188_s30 = sshll.u32 %s1504_s29, 4  ;;  %p983_p10 = scmp.ge.s32.totalorder %s1502_s20, 2  ;;  %s189_s30 = int_to_ptr.vmem [resolvable:$true] %s188_s30 }
   0xe   : > { %p1251_p8 = pneg %p1588_p7  ;;  %s201_s7 = sshll.u32 %s1778_s2, 4  ;;  %s202_s7 = int_to_ptr.hbm [resolvable:$true] %s201_s7 }
   0xf   : > { %s1505_s8 = smov 128   ;;  %s1506_s9 = smov 8  }
  0x10   : > { %p1252_p9 = pnand %p1251_p8, %p1569_p1  ;;  %s1507_s10 = smov [#allocation7]  }
  0x11   : > { %s203_s11 = sshll.u32 %s1507_s10, 4  ;;  %p158_p11 = scmp.eq.s32.totalorder %s978_s3, 1  ;;  %s204_s11 = int_to_ptr.vmem [resolvable:$true] %s203_s11 }
  0x12   : > { %1254 = dma.hbm_to_vmem [thread:$0]  (!%p1252_p9), %s187_s27, 4096, %s189_s30, [#allocation6], %s1505_s8, %s1505_s8, %s1506_s9  }
  0x13   : > { %1257 = dma.hbm_to_vmem [thread:$0]  (!%p1252_p9), %s202_s7, 32, %s204_s11, [#allocation6]  }
  0x14   : > { %s40_s12 = sadd.s32 1, %s1498_s19  ;;  %s51_s13 = sadd.s32 1, %s1490_s17 }
  0x15   : > { %p42_p12 = scmp.ge.s32.totalorder %s40_s12, 2  ;;  %p58_p13 = scmp.ne.s32.totalorder %s1490_s17, %s1486_s16 }
  0x16   : > { %p59_p0 = scmp.eq.s32.totalorder %s1502_s20, 0  ;;  %p1268_p4 = scmp.lt.s32.totalorder %s1502_s20, 2 }
  0x17   : > { %s1792_s12 = smov (%p42_p12, %s40_s12), 0  ;;  %p1610_p2 = por %p158_p11, %p58_p13 }
  0x18   : > { %s44_s21 = ssub.s32 %s1498_s19, %s1792_s12  ;;  %s217_s25 = sand.u32 1, %s1490_s17  }
  0x19   : > { %p49_p6 = scmp.eq.s32.totalorder %s44_s21, 0  ;;  %p60_p8 = por %p59_p0, %p58_p13 }
  0x1a   : > { %s984_s26 = sshll.u32 %s217_s25, 7  ;;  %s1189_s3 = sshll.u32 %s1498_s19, 7 }
  0x1b   : > { %s1620_s27 = scalar_select %p49_p6, %s1490_s17, %s51_s13  }
  0x1c   : > { %s231_s5 = scalar_lea.hbm %s1776_s0, %s1189_s3  ;;  %s221_s7 = scalar_lea.vmem [#allocation2], %s984_s26 }
  0x1d   : > { %s232_s6 = sshll.u32 %s231_s5, 4  ;;  %s234_s10 = sshll.u32 %s221_s7, 4  ;;  %s233_s6 = int_to_ptr.hbm [resolvable:$true] %s232_s6  ;;  %s235_s10 = int_to_ptr.vmem [resolvable:$true] %s234_s10 }
  0x1e   : > { %p1259_p9 = pnand %p1268_p4, %p60_p8  ;;  %s218_s11 = scalar_lea.sflag [#allocation3], %s217_s25 }
  0x1f   : > { %246 = sbr.rel (%p1588_p7) target bundleno = 339 (0x153), region = 36  ;;  %s1633_s13 = sand.u32 (!%p1588_p7), 1, %s1486_s16  }
  0x20   : > { %1261 = dma.hbm_to_vmem [thread:$0]  (!%p1259_p9), %s233_s6, 2048, %s235_s10, %s218_s11, %s1505_s8, %s1505_s8, %s1506_s9  }
  0x21   : > { %s988_s21 = sshll.u32 (!%p1588_p7), %s1633_s13, 7  ;;  %s249_s26 = scalar_lea.sflag (!%p1588_p7), [#allocation3], %s1633_s13 }
  0x22   : > { %s1639_s3 = scalar_lea.vmem (!%p1588_p7), [#allocation2], %s988_s21 }
  0x24   : > { %1469 = dma.done.wait (%p1575_p3), %s249_s26, 2048  }
  0x25   : > { %1471 = vsyncadd (%p1575_p3), %s249_s26, 4294965248 }
  0x26   : > { %1473 = dma.done.wait (%p1569_p1), [#allocation6], 4128  }
  0x27   : > { %1475 = vsyncadd (%p1569_p1), [#allocation6], 4294963168  ;;  %v1114_v0 = vld [vmem:[#allocation5 + $0x70] sm:$0xf]  ;;  %v1221_v1 = vld [vmem:[#allocation5 + $0x74] sm:$0xf0] }
  0x28   : > { %v1178_v2 = vld [vmem:[#allocation5 + $0xf0] sm:$0xf]  ;;  %v1115_v3 = vor.u32 %v1221_v1, %v1114_v0  ;;  %v1237_v4 = vld [vmem:[#allocation5 + $0xf4] sm:$0xf0]  ;;  %v1220_v5 = vld [vmem:[#allocation5 + $0x74] sm:$0xf] }
  0x29   : > { %v1116_v6 = vld [vmem:[#allocation5 + $0x78] sm:$0xf0]  ;;  %v1179_v7 = vor.u32 %v1237_v4, %v1178_v2  ;;  %v1236_v9 = vld [vmem:[#allocation5 + $0xf4] sm:$0xf]  ;;  %v1106_v11 = vld [vmem:[#allocation5 + $0x60] sm:$0xf] }
  0x2a   : > { %v1119_v8 = vor.u32 %v1220_v5, %v1116_v6  ;;  %v1180_v10 = vld [vmem:[#allocation5 + $0xf8] sm:$0xf0]  ;;  %586 = vmatpush.bf16.msra.mxu0 %v1115_v3  ;;  %v1219_v13 = vld [vmem:[#allocation5 + $0x64] sm:$0xf0]  ;;  %v1170_v14 = vld [vmem:[#allocation5 + $0xe0] sm:$0xf] }
  0x2b   : > { %v1183_v12 = vor.u32 %v1236_v9, %v1180_v10  ;;  %v1235_v15 = vld [vmem:[#allocation5 + $0xe4] sm:$0xf0]  ;;  %635 = vmatpush.bf16.msra.mxu1 %v1179_v7  ;;  %v1107_v16 = vor.u32 %v1219_v13, %v1106_v11  ;;  %v1218_v18 = vld [vmem:[#allocation5 + $0x64] sm:$0xf]  ;;  %v1108_v19 = vld [vmem:[#allocation5 + $0x68] sm:$0xf0] }
  0x2c   : > { %684 = vmatpush.bf16.msra.mxu2 %v1119_v8  ;;  %v1171_v17 = vor.u32 %v1235_v15, %v1170_v14  ;;  %v1234_v20 = vld [vmem:[#allocation5 + $0xe4] sm:$0xf]  ;;  %v1111_v21 = vor.u32 %v1218_v18, %v1108_v19  ;;  %v1172_v22 = vld [vmem:[#allocation5 + $0xe8] sm:$0xf0]  ;;  %v1098_v23 = vld [vmem:[#allocation5 + $0x50] sm:$0xf] }
  0x2d   : > { %733 = vmatpush.bf16.msra.mxu3 %v1183_v12  ;;  %v1217_v24 = vld [vmem:[#allocation5 + $0x54] sm:$0xf0]  ;;  %v1175_v25 = vor.u32 %v1234_v20, %v1172_v22  ;;  %v1162_v26 = vld [vmem:[#allocation5 + $0xd0] sm:$0xf]  ;;  %v1216_v28 = vld [vmem:[#allocation5 + $0x54] sm:$0xf] }
  0x2e   : > { %v1233_v27 = vld [vmem:[#allocation5 + $0xd4] sm:$0xf0]  ;;  %587 = vmatpush.bf16.msra.mxu0 %v1107_v16  ;;  %v1099_v29 = vor.u32 %v1217_v24, %v1098_v23  ;;  %v1100_v30 = vld [vmem:[#allocation5 + $0x58] sm:$0xf0]  ;;  %v1232_v31 = vld [vmem:[#allocation5 + $0xd4] sm:$0xf] }
  0x2f   : > { %v1164_v32 = vld [vmem:[#allocation5 + $0xd8] sm:$0xf0]  ;;  %636 = vmatpush.bf16.msra.mxu1 %v1171_v17  ;;  %v1163_v33 = vor.u32 %v1233_v27, %v1162_v26  ;;  %v1103_v34 = vor.u32 %v1216_v28, %v1100_v30  ;;  %v1090_v35 = vld [vmem:[#allocation5 + $0x40] sm:$0xf]  ;;  %v1215_v36 = vld [vmem:[#allocation5 + $0x44] sm:$0xf0] }
  0x30   : > { %685 = vmatpush.bf16.msra.mxu2 %v1111_v21  ;;  %v1154_v37 = vld [vmem:[#allocation5 + $0xc0] sm:$0xf]  ;;  %v1167_v38 = vor.u32 %v1232_v31, %v1164_v32  ;;  %v1231_v39 = vld [vmem:[#allocation5 + $0xc4] sm:$0xf0]  ;;  %v1214_v40 = vld [vmem:[#allocation5 + $0x44] sm:$0xf]  ;;  %v1091_v44 = vor.u32 %v1215_v36, %v1090_v35 }
  0x31   : > { %734 = vmatpush.bf16.msra.mxu3 %v1175_v25  ;;  %v1092_v41 = vld [vmem:[#allocation5 + $0x48] sm:$0xf0]  ;;  %v1230_v42 = vld [vmem:[#allocation5 + $0xc4] sm:$0xf]  ;;  %v1155_v45 = vor.u32 %v1231_v39, %v1154_v37  ;;  %v1082_v47 = vld [vmem:[#allocation5 + $0x30] sm:$0xf] }
  0x32   : > { %v1156_v43 = vld [vmem:[#allocation5 + $0xc8] sm:$0xf0]  ;;  %588 = vmatpush.bf16.msra.mxu0 %v1099_v29  ;;  %v1095_v46 = vor.u32 %v1214_v40, %v1092_v41  ;;  %v1213_v48 = vld [vmem:[#allocation5 + $0x34] sm:$0xf0]  ;;  %v1146_v49 = vld [vmem:[#allocation5 + $0xb0] sm:$0xf] }
  0x33   : > { %637 = vmatpush.bf16.msra.mxu1 %v1163_v33  ;;  %v1159_v50 = vor.u32 %v1230_v42, %v1156_v43  ;;  %v1229_v51 = vld [vmem:[#allocation5 + $0xb4] sm:$0xf0]  ;;  %v1212_v52 = vld [vmem:[#allocation5 + $0x34] sm:$0xf]  ;;  %v1084_v53 = vld [vmem:[#allocation5 + $0x38] sm:$0xf0]  ;;  %v1083_v56 = vor.u32 %v1213_v48, %v1082_v47 }
  0x34   : > { %686 = vmatpush.bf16.msra.mxu2 %v1103_v34  ;;  %v1228_v54 = vld [vmem:[#allocation5 + $0xb4] sm:$0xf]  ;;  %v1148_v55 = vld [vmem:[#allocation5 + $0xb8] sm:$0xf0]  ;;  %v1147_v57 = vor.u32 %v1229_v51, %v1146_v49  ;;  %v1087_v58 = vor.u32 %v1212_v52, %v1084_v53  ;;  %v1074_v59 = vld [vmem:[#allocation5 + $0x20] sm:$0xf] }
  0x35   : > { %735 = vmatpush.bf16.msra.mxu3 %v1167_v38  ;;  %v1211_v60 = vld [vmem:[#allocation5 + $0x24] sm:$0xf0]  ;;  %v1138_v61 = vld [vmem:[#allocation5 + $0xa0] sm:$0xf]  ;;  %v1151_v62 = vor.u32 %v1228_v54, %v1148_v55  ;;  %v1210_v0 = vld [vmem:[#allocation5 + $0x24] sm:$0xf] }
  0x36   : > { %589 = vmatpush.bf16.msra.mxu0 %v1091_v44  ;;  %v1227_v63 = vld [vmem:[#allocation5 + $0xa4] sm:$0xf0]  ;;  %v1076_v1 = vld [vmem:[#allocation5 + $0x28] sm:$0xf0]  ;;  %v1226_v2 = vld [vmem:[#allocation5 + $0xa4] sm:$0xf]  ;;  %v1075_v4 = vor.u32 %v1211_v60, %v1074_v59 }
  0x37   : > { %638 = vmatpush.bf16.msra.mxu1 %v1155_v45  ;;  %v1140_v3 = vld [vmem:[#allocation5 + $0xa8] sm:$0xf0]  ;;  %v1139_v5 = vor.u32 %v1227_v63, %v1138_v61  ;;  %v1079_v6 = vor.u32 %v1210_v0, %v1076_v1  ;;  %v1066_v7 = vld [vmem:[#allocation5 + $0x10] sm:$0xf]  ;;  %v1209_v8 = vld [vmem:[#allocation5 + $0x14] sm:$0xf0] }
  0x38   : > { %687 = vmatpush.bf16.msra.mxu2 %v1095_v46  ;;  %v1130_v9 = vld [vmem:[#allocation5 + $0x90] sm:$0xf]  ;;  %v1143_v10 = vor.u32 %v1226_v2, %v1140_v3  ;;  %v1225_v11 = vld [vmem:[#allocation5 + $0x94] sm:$0xf0]  ;;  %v1208_v12 = vld [vmem:[#allocation5 + $0x14] sm:$0xf]  ;;  %v1067_v16 = vor.u32 %v1209_v8, %v1066_v7 }
  0x39   : > { %736 = vmatpush.bf16.msra.mxu3 %v1159_v50  ;;  %v1068_v13 = vld [vmem:[#allocation5 + $0x18] sm:$0xf0]  ;;  %v1224_v14 = vld [vmem:[#allocation5 + $0x94] sm:$0xf]  ;;  %v1131_v17 = vor.u32 %v1225_v11, %v1130_v9  ;;  %v1058_v19 = vld [vmem:[#allocation5] sm:$0xf] }
  0x3a   : > { %590 = vmatpush.bf16.msra.mxu0 %v1083_v56  ;;  %v1132_v15 = vld [vmem:[#allocation5 + $0x98] sm:$0xf0]  ;;  %v1071_v18 = vor.u32 %v1208_v12, %v1068_v13  ;;  %v1207_v20 = vld [vmem:[#allocation5 + $0x4] sm:$0xf0]  ;;  %v1122_v21 = vld [vmem:[#allocation5 + $0x80] sm:$0xf] }
  0x3b   : > { %639 = vmatpush.bf16.msra.mxu1 %v1147_v57  ;;  %v1135_v22 = vor.u32 %v1224_v14, %v1132_v15  ;;  %v1223_v23 = vld [vmem:[#allocation5 + $0x84] sm:$0xf0]  ;;  %v1206_v24 = vld [vmem:[#allocation5 + $0x4] sm:$0xf]  ;;  %v1060_v25 = vld [vmem:[#allocation5 + $0x8] sm:$0xf0]  ;;  %v1059_v28 = vor.u32 %v1207_v20, %v1058_v19 }
  0x3c   : > { %688 = vmatpush.bf16.msra.mxu2 %v1087_v58  ;;  %v1222_v26 = vld [vmem:[#allocation5 + $0x84] sm:$0xf]  ;;  %v1124_v27 = vld [vmem:[#allocation5 + $0x88] sm:$0xf0]  ;;  %v994_v29 = vld [vmem:[%s1639_s3] sm:$0xf]  ;;  %v1123_v31 = vor.u32 %v1223_v23, %v1122_v21  ;;  %v1063_v32 = vor.u32 %v1206_v24, %v1060_v25 }
  0x3d   : > { %737 = vmatpush.bf16.msra.mxu3 %v1151_v62  ;;  %v1191_v30 = vld [vmem:[%s1639_s3 + $0x4] sm:$0xf0]  ;;  %v1190_v33 = vld [vmem:[%s1639_s3 + $0x4] sm:$0xf]  ;;  %v996_v34 = vld [vmem:[%s1639_s3 + $0x8] sm:$0xf0]  ;;  %v1127_v35 = vor.u32 %v1222_v26, %v1124_v27 }
  0x3e   : > { %591 = vmatpush.bf16.msra.mxu0 %v1075_v4  ;;  %v995_v36 = vor.u32 %v1191_v30, %v994_v29  ;;  %v999_v37 = vor.u32 %v1190_v33, %v996_v34  ;;  %v1002_v38 = vld [vmem:[%s1639_s3 + $0x10] sm:$0xf]  ;;  %v1193_v39 = vld [vmem:[%s1639_s3 + $0x14] sm:$0xf0]  ;;  %v1192_v40 = vld [vmem:[%s1639_s3 + $0x14] sm:$0xf] }
  0x3f   : > { %640 = vmatpush.bf16.msra.mxu1 %v1139_v5  ;;  %v1004_v41 = vld [vmem:[%s1639_s3 + $0x18] sm:$0xf0]  ;;  %v1003_v42 = vor.u32 %v1193_v39, %v1002_v38  ;;  %v1010_v44 = vld [vmem:[%s1639_s3 + $0x20] sm:$0xf]  ;;  %v1195_v45 = vld [vmem:[%s1639_s3 + $0x24] sm:$0xf0] }
  0x40   : > { %689 = vmatpush.bf16.msra.mxu2 %v1079_v6  ;;  %v1007_v43 = vor.u32 %v1192_v40, %v1004_v41  ;;  %v1194_v46 = vld [vmem:[%s1639_s3 + $0x24] sm:$0xf]  ;;  %v1012_v47 = vld [vmem:[%s1639_s3 + $0x28] sm:$0xf0]  ;;  %v1011_v48 = vor.u32 %v1195_v45, %v1010_v44  ;;  %v1018_v50 = vld [vmem:[%s1639_s3 + $0x30] sm:$0xf] }
  0x41   : > { %738 = vmatpush.bf16.msra.mxu3 %v1143_v10  ;;  %v1015_v49 = vor.u32 %v1194_v46, %v1012_v47  ;;  %v1197_v51 = vld [vmem:[%s1639_s3 + $0x34] sm:$0xf0]  ;;  %v1196_v52 = vld [vmem:[%s1639_s3 + $0x34] sm:$0xf]  ;;  %v1020_v53 = vld [vmem:[%s1639_s3 + $0x38] sm:$0xf0] }
  0x42   : > { %592 = vmatpush.bf16.msra.mxu0 %v1067_v16  ;;  %v1019_v54 = vor.u32 %v1197_v51, %v1018_v50  ;;  %v1023_v55 = vor.u32 %v1196_v52, %v1020_v53  ;;  %v1026_v56 = vld [vmem:[%s1639_s3 + $0x40] sm:$0xf]  ;;  %v1199_v57 = vld [vmem:[%s1639_s3 + $0x44] sm:$0xf0]  ;;  %v1198_v58 = vld [vmem:[%s1639_s3 + $0x44] sm:$0xf] }
  0x43   : > { %641 = vmatpush.bf16.msra.mxu1 %v1131_v17  ;;  %v1028_v59 = vld [vmem:[%s1639_s3 + $0x48] sm:$0xf0]  ;;  %v1027_v60 = vor.u32 %v1199_v57, %v1026_v56  ;;  %v1034_v62 = vld [vmem:[%s1639_s3 + $0x50] sm:$0xf]  ;;  %v1201_v63 = vld [vmem:[%s1639_s3 + $0x54] sm:$0xf0] }
  0x44   : > { %690 = vmatpush.bf16.msra.mxu2 %v1071_v18  ;;  %v1031_v61 = vor.u32 %v1198_v58, %v1028_v59  ;;  %v1200_v0 = vld [vmem:[%s1639_s3 + $0x54] sm:$0xf]  ;;  %v1036_v1 = vld [vmem:[%s1639_s3 + $0x58] sm:$0xf0]  ;;  %v1035_v2 = vor.u32 %v1201_v63, %v1034_v62  ;;  %v1042_v4 = vld [vmem:[%s1639_s3 + $0x60] sm:$0xf] }
  0x45   : > { %739 = vmatpush.bf16.msra.mxu3 %v1135_v22  ;;  %v1039_v3 = vor.u32 %v1200_v0, %v1036_v1  ;;  %v1203_v5 = vld [vmem:[%s1639_s3 + $0x64] sm:$0xf0]  ;;  %v1202_v6 = vld [vmem:[%s1639_s3 + $0x64] sm:$0xf]  ;;  %v1044_v7 = vld [vmem:[%s1639_s3 + $0x68] sm:$0xf0] }
  0x46   : > { %593 = vmatpush.bf16.msra.mxu0 %v1059_v28  ;;  %v1043_v8 = vor.u32 %v1203_v5, %v1042_v4  ;;  %v1047_v9 = vor.u32 %v1202_v6, %v1044_v7  ;;  %v1050_v10 = vld [vmem:[%s1639_s3 + $0x70] sm:$0xf]  ;;  %v1205_v11 = vld [vmem:[%s1639_s3 + $0x74] sm:$0xf0]  ;;  %v1204_v12 = vld [vmem:[%s1639_s3 + $0x74] sm:$0xf] }
  0x47   : > { %642 = vmatpush.bf16.msra.mxu1 %v1123_v31  ;;  %v1052_v13 = vld [vmem:[%s1639_s3 + $0x78] sm:$0xf0]  ;;  %v1051_v14 = vor.u32 %v1205_v11, %v1050_v10  ;;  %v340_v16 = vld [vmem:[#allocation7] sm:$0x3]  ;;  %s1690_s22 = scalar_lea.vmem [#allocation8], %s988_s21  ;;  %s1238_s23 = sshll.u32 %s1494_s18, 7 }
  0x48   : > { %691 = vmatpush.bf16.msra.mxu2 %v1063_v32  ;;  %v1055_v15 = vor.u32 %v1204_v12, %v1052_v13  ;;  %v1681_v17 = vperm.slane %v340_v16, 0  ;;  %v1684_v21 = vperm.slane %v340_v16, 1  ;;  %s861_s9 = scalar_lea.hbm %s1780_s4, %s1238_s23  ;;  %s862_s25 = sshll.u32 %s1690_s22, 4  ;;  %s863_s25 = int_to_ptr.vmem [resolvable:$true] %s862_s25 }
  0x49   : > { %740 = vmatpush.bf16.msra.mxu3 %v1127_v35  ;;  %594 = vmatmul.bf16.vlgmr.msra.gmra.mxu0 %v995_v36  ;;  %s864_s29 = sshll.u32 %s861_s9, 4  ;;  %s847_s18 = scalar_lea.sflag [#allocation4], %s1633_s13  ;;  %s865_s29 = int_to_ptr.hbm [resolvable:$true] %s864_s29 }
  0x4a   : > { %643 = vmatmul.bf16.vlgmr.msra.gmra.mxu1 %v999_v37  ;;  %s1430_s30 = sshra.s32 %s865_s29, 4  ;;  %s1436_s10 = scalar_lea.hbm %s1780_s4, 256  ;;  %s1431_s30 = int_to_ptr.hbm [resolvable:$true] %s1430_s30 }
  0x4b   : > { %692 = vmatmul.bf16.vlgmr.msra.gmra.mxu2 %v995_v36  ;;  %s1432_s5 = scalar_lea.hbm %s1431_s30, 128  ;;  %p1437_p11 = scmp.lt.s32.totalorder %s1431_s30, %s1780_s4 }
  0x4c   : > { %741 = vmatmul.bf16.vlgmr.msra.gmra.mxu3 %v999_v37  ;;  %p1433_p1 = scmp.ne.s32.totalorder %s1431_s30, %s1432_s5  ;;  %p1438_p12 = scmp.lt.s32.totalorder %s1436_s10, %s1432_s5 }
  0x4e   : > { %p1434_p3 = pnand %p1433_p1, %p1610_p2  ;;  %p1439_p13 = por %p1438_p12, %p1437_p11 }
  0x50   : > { %p1435_p7 = pneg %p1434_p3 }
  0x52   : > { %p1440_p0 = pnand %p1439_p13, %p1435_p7 }
  0x59   : > { %599 = vmatmul.bf16.gmra.mxu0 %v1003_v42 }
  0x5a   : > { %648 = vmatmul.bf16.gmra.mxu1 %v1007_v43 }
  0x5b   : > { %697 = vmatmul.bf16.gmra.mxu2 %v1003_v42 }
  0x5c   : > { %746 = vmatmul.bf16.gmra.mxu3 %v1007_v43 }
  0x69   : > { %604 = vmatmul.bf16.gmra.mxu0 %v1011_v48 }
  0x6a   : > { %653 = vmatmul.bf16.gmra.mxu1 %v1015_v49 }
  0x6b   : > { %702 = vmatmul.bf16.gmra.mxu2 %v1011_v48 }
  0x6c   : > { %751 = vmatmul.bf16.gmra.mxu3 %v1015_v49 }
  0x79   : > { %609 = vmatmul.bf16.gmra.mxu0 %v1019_v54 }
  0x7a   : > { %658 = vmatmul.bf16.gmra.mxu1 %v1023_v55 }
  0x7b   : > { %707 = vmatmul.bf16.gmra.mxu2 %v1019_v54 }
  0x7c   : > { %756 = vmatmul.bf16.gmra.mxu3 %v1023_v55 }
  0x89   : > { %614 = vmatmul.bf16.gmra.mxu0 %v1027_v60 }
  0x8a   : > { %663 = vmatmul.bf16.gmra.mxu1 %v1031_v61 }
  0x8b   : > { %712 = vmatmul.bf16.gmra.mxu2 %v1027_v60 }
  0x8c   : > { %761 = vmatmul.bf16.gmra.mxu3 %v1031_v61 }
  0x99   : > { %619 = vmatmul.bf16.gmra.mxu0 %v1035_v2 }
  0x9a   : > { %668 = vmatmul.bf16.gmra.mxu1 %v1039_v3 }
  0x9b   : > { %717 = vmatmul.bf16.gmra.mxu2 %v1035_v2 }
  0x9c   : > { %766 = vmatmul.bf16.gmra.mxu3 %v1039_v3 }
  0xa9   : > { %624 = vmatmul.bf16.gmra.mxu0 %v1043_v8 }
  0xaa   : > { %673 = vmatmul.bf16.gmra.mxu1 %v1047_v9 }
  0xab   : > { %722 = vmatmul.bf16.gmra.mxu2 %v1043_v8 }
  0xac   : > { %771 = vmatmul.bf16.gmra.mxu3 %v1047_v9 }
  0xb9   : > { %629 = vmatmul.bf16.gmra.mxu0 %v1051_v14 }
  0xba   : > { %678 = vmatmul.bf16.gmra.mxu1 %v1055_v15 }
  0xbb   : > { %727 = vmatmul.bf16.gmra.mxu2 %v1051_v14 }
  0xbc   : > { %776 = vmatmul.bf16.gmra.mxu3 %v1055_v15 }
  0xc6   : > { %v595_v18 = vpop.f32.mrf.mxu0 }
  0xc7   : > { %v644_v19 = vpop.f32.mrf.mxu1  ;;  %v596_v20 = vadd.f32 %v595_v18, %v1681_v17 }
  0xc9   : > { %v645_v22 = vadd.f32 %v644_v19, %v596_v20 }
  0xcb   : > { %v782_v28 = vmul.f32 0.088388346, %v645_v22 }
  0xce   : > { %v693_v23 = vpop.f32.mrf.mxu2  ;;  %v597_v26 = vpop.f32.mrf.mxu0 }
  0xcf   : > { %v694_v24 = vadd.f32 %v693_v23, %v1684_v21  ;;  %v742_v25 = vpop.f32.mrf.mxu3  ;;  %v646_v27 = vpop.f32.mrf.mxu1  ;;  %v598_v31 = vadd.f32 %v597_v26, %v1681_v17 }
  0xd1   : > { %v743_v29 = vadd.f32 %v742_v25, %v694_v24  ;;  %v647_v34 = vadd.f32 %v646_v27, %v598_v31 }
  0xd3   : > { %v783_v30 = vmul.f32 0.088388346, %v743_v29  ;;  %v784_v41 = vmul.f32 0.088388346, %v647_v34 }
  0xd5   : > { %v814_v32 = vpack.c.bf16 %v783_v30, %v782_v28 }
  0xd6   : > { %v695_v33 = vpop.f32.mrf.mxu2  ;;  %v600_v37 = vpop.f32.mrf.mxu0 }
  0xd7   : > { %830 = vst [vmem:[%s1690_s22] sm:$0xff] %v814_v32  ;;  %v696_v35 = vadd.f32 %v695_v33, %v1684_v21  ;;  %v744_v36 = vpop.f32.mrf.mxu3  ;;  %v649_v38 = vpop.f32.mrf.mxu1  ;;  %v601_v40 = vadd.f32 %v600_v37, %v1681_v17 }
  0xd9   : > { %v745_v39 = vadd.f32 %v744_v36, %v696_v35  ;;  %v650_v44 = vadd.f32 %v649_v38, %v601_v40 }
  0xdb   : > { %v785_v42 = vmul.f32 0.088388346, %v745_v39  ;;  %v786_v50 = vmul.f32 0.088388346, %v650_v44 }
  0xdd   : > { %v815_v43 = vpack.c.bf16 %v785_v42, %v784_v41 }
  0xde   : > { %v698_v45 = vpop.f32.mrf.mxu2  ;;  %v602_v48 = vpop.f32.mrf.mxu0 }
  0xdf   : > { %831 = vst [vmem:[%s1690_s22 + $0x8] sm:$0xff] %v815_v43  ;;  %v699_v46 = vadd.f32 %v698_v45, %v1684_v21  ;;  %v747_v47 = vpop.f32.mrf.mxu3  ;;  %v651_v49 = vpop.f32.mrf.mxu1  ;;  %v603_v53 = vadd.f32 %v602_v48, %v1681_v17 }
  0xe1   : > { %v748_v51 = vadd.f32 %v747_v47, %v699_v46  ;;  %v652_v56 = vadd.f32 %v651_v49, %v603_v53 }
  0xe3   : > { %v787_v52 = vmul.f32 0.088388346, %v748_v51  ;;  %v788_v63 = vmul.f32 0.088388346, %v652_v56 }
  0xe5   : > { %v816_v54 = vpack.c.bf16 %v787_v52, %v786_v50 }
  0xe6   : > { %v700_v55 = vpop.f32.mrf.mxu2  ;;  %v605_v59 = vpop.f32.mrf.mxu0 }
  0xe7   : > { %832 = vst [vmem:[%s1690_s22 + $0x10] sm:$0xff] %v816_v54  ;;  %v701_v57 = vadd.f32 %v700_v55, %v1684_v21  ;;  %v749_v58 = vpop.f32.mrf.mxu3  ;;  %v654_v60 = vpop.f32.mrf.mxu1  ;;  %v606_v62 = vadd.f32 %v605_v59, %v1681_v17 }
  0xe9   : > { %v750_v61 = vadd.f32 %v749_v58, %v701_v57  ;;  %v655_v2 = vadd.f32 %v654_v60, %v606_v62 }
  0xeb   : > { %v789_v0 = vmul.f32 0.088388346, %v750_v61  ;;  %v790_v8 = vmul.f32 0.088388346, %v655_v2 }
  0xed   : > { %v817_v1 = vpack.c.bf16 %v789_v0, %v788_v63 }
  0xee   : > { %v703_v3 = vpop.f32.mrf.mxu2  ;;  %v607_v6 = vpop.f32.mrf.mxu0 }
  0xef   : > { %833 = vst [vmem:[%s1690_s22 + $0x18] sm:$0xff] %v817_v1  ;;  %v704_v4 = vadd.f32 %v703_v3, %v1684_v21  ;;  %v752_v5 = vpop.f32.mrf.mxu3  ;;  %v656_v7 = vpop.f32.mrf.mxu1  ;;  %v608_v11 = vadd.f32 %v607_v6, %v1681_v17 }
  0xf1   : > { %v753_v9 = vadd.f32 %v752_v5, %v704_v4  ;;  %v657_v14 = vadd.f32 %v656_v7, %v608_v11 }
  0xf3   : > { %v791_v10 = vmul.f32 0.088388346, %v753_v9  ;;  %v792_v23 = vmul.f32 0.088388346, %v657_v14 }
  0xf5   : > { %v818_v12 = vpack.c.bf16 %v791_v10, %v790_v8 }
  0xf6   : > { %v705_v13 = vpop.f32.mrf.mxu2  ;;  %v610_v18 = vpop.f32.mrf.mxu0 }
  0xf7   : > { %834 = vst [vmem:[%s1690_s22 + $0x20] sm:$0xff] %v818_v12  ;;  %v706_v15 = vadd.f32 %v705_v13, %v1684_v21  ;;  %v754_v16 = vpop.f32.mrf.mxu3  ;;  %v659_v19 = vpop.f32.mrf.mxu1  ;;  %v611_v22 = vadd.f32 %v610_v18, %v1681_v17 }
  0xf9   : > { %v755_v20 = vadd.f32 %v754_v16, %v706_v15  ;;  %v660_v26 = vadd.f32 %v659_v19, %v611_v22 }
  0xfb   : > { %v793_v24 = vmul.f32 0.088388346, %v755_v20  ;;  %v794_v32 = vmul.f32 0.088388346, %v660_v26 }
  0xfd   : > { %v819_v25 = vpack.c.bf16 %v793_v24, %v792_v23 }
  0xfe   : > { %v708_v27 = vpop.f32.mrf.mxu2  ;;  %v612_v30 = vpop.f32.mrf.mxu0 }
  0xff   : > { %835 = vst [vmem:[%s1690_s22 + $0x28] sm:$0xff] %v819_v25  ;;  %v709_v28 = vadd.f32 %v708_v27, %v1684_v21  ;;  %v757_v29 = vpop.f32.mrf.mxu3  ;;  %v661_v31 = vpop.f32.mrf.mxu1  ;;  %v613_v35 = vadd.f32 %v612_v30, %v1681_v17 }
 0x101   : > { %v758_v33 = vadd.f32 %v757_v29, %v709_v28  ;;  %v662_v38 = vadd.f32 %v661_v31, %v613_v35 }
 0x103   : > { %v795_v34 = vmul.f32 0.088388346, %v758_v33  ;;  %v796_v45 = vmul.f32 0.088388346, %v662_v38 }
 0x105   : > { %v820_v36 = vpack.c.bf16 %v795_v34, %v794_v32 }
 0x106   : > { %v710_v37 = vpop.f32.mrf.mxu2  ;;  %v615_v41 = vpop.f32.mrf.mxu0 }
 0x107   : > { %836 = vst [vmem:[%s1690_s22 + $0x30] sm:$0xff] %v820_v36  ;;  %v711_v39 = vadd.f32 %v710_v37, %v1684_v21  ;;  %v759_v40 = vpop.f32.mrf.mxu3  ;;  %v664_v42 = vpop.f32.mrf.mxu1  ;;  %v616_v44 = vadd.f32 %v615_v41, %v1681_v17 }
 0x109   : > { %v760_v43 = vadd.f32 %v759_v40, %v711_v39  ;;  %v665_v48 = vadd.f32 %v664_v42, %v616_v44 }
 0x10b   : > { %v797_v46 = vmul.f32 0.088388346, %v760_v43  ;;  %v798_v54 = vmul.f32 0.088388346, %v665_v48 }
 0x10d   : > { %v821_v47 = vpack.c.bf16 %v797_v46, %v796_v45 }
 0x10e   : > { %v713_v49 = vpop.f32.mrf.mxu2  ;;  %v617_v52 = vpop.f32.mrf.mxu0 }
 0x10f   : > { %837 = vst [vmem:[%s1690_s22 + $0x38] sm:$0xff] %v821_v47  ;;  %v714_v50 = vadd.f32 %v713_v49, %v1684_v21  ;;  %v762_v51 = vpop.f32.mrf.mxu3  ;;  %v666_v53 = vpop.f32.mrf.mxu1  ;;  %v618_v57 = vadd.f32 %v617_v52, %v1681_v17 }
 0x111   : > { %v763_v55 = vadd.f32 %v762_v51, %v714_v50  ;;  %v667_v60 = vadd.f32 %v666_v53, %v618_v57 }
 0x113   : > { %v799_v56 = vmul.f32 0.088388346, %v763_v55  ;;  %v800_v3 = vmul.f32 0.088388346, %v667_v60 }
 0x115   : > { %v822_v58 = vpack.c.bf16 %v799_v56, %v798_v54 }
 0x116   : > { %v715_v59 = vpop.f32.mrf.mxu2  ;;  %v620_v63 = vpop.f32.mrf.mxu0 }
 0x117   : > { %838 = vst [vmem:[%s1690_s22 + $0x40] sm:$0xff] %v822_v58  ;;  %v716_v61 = vadd.f32 %v715_v59, %v1684_v21  ;;  %v764_v62 = vpop.f32.mrf.mxu3  ;;  %v669_v0 = vpop.f32.mrf.mxu1  ;;  %v621_v2 = vadd.f32 %v620_v63, %v1681_v17 }
 0x119   : > { %v765_v1 = vadd.f32 %v764_v62, %v716_v61  ;;  %v670_v6 = vadd.f32 %v669_v0, %v621_v2 }
 0x11b   : > { %v801_v4 = vmul.f32 0.088388346, %v765_v1  ;;  %v802_v12 = vmul.f32 0.088388346, %v670_v6 }
 0x11d   : > { %v823_v5 = vpack.c.bf16 %v801_v4, %v800_v3 }
 0x11e   : > { %v718_v7 = vpop.f32.mrf.mxu2  ;;  %v622_v10 = vpop.f32.mrf.mxu0 }
 0x11f   : > { %839 = vst [vmem:[%s1690_s22 + $0x48] sm:$0xff] %v823_v5  ;;  %v719_v8 = vadd.f32 %v718_v7, %v1684_v21  ;;  %v767_v9 = vpop.f32.mrf.mxu3  ;;  %v671_v11 = vpop.f32.mrf.mxu1  ;;  %v623_v15 = vadd.f32 %v622_v10, %v1681_v17 }
 0x121   : > { %v768_v13 = vadd.f32 %v767_v9, %v719_v8  ;;  %v672_v19 = vadd.f32 %v671_v11, %v623_v15 }
 0x123   : > { %v803_v14 = vmul.f32 0.088388346, %v768_v13  ;;  %v804_v27 = vmul.f32 0.088388346, %v672_v19 }
 0x125   : > { %v824_v16 = vpack.c.bf16 %v803_v14, %v802_v12 }
 0x126   : > { %v720_v18 = vpop.f32.mrf.mxu2  ;;  %v625_v23 = vpop.f32.mrf.mxu0 }
 0x127   : > { %840 = vst [vmem:[%s1690_s22 + $0x50] sm:$0xff] %v824_v16  ;;  %v721_v20 = vadd.f32 %v720_v18, %v1684_v21  ;;  %v769_v22 = vpop.f32.mrf.mxu3  ;;  %v674_v24 = vpop.f32.mrf.mxu1  ;;  %v626_v26 = vadd.f32 %v625_v23, %v1681_v17 }
 0x129   : > { %v770_v25 = vadd.f32 %v769_v22, %v721_v20  ;;  %v675_v30 = vadd.f32 %v674_v24, %v626_v26 }
 0x12b   : > { %v805_v28 = vmul.f32 0.088388346, %v770_v25  ;;  %v806_v35 = vmul.f32 0.088388346, %v675_v30 }
 0x12d   : > { %v825_v29 = vpack.c.bf16 %v805_v28, %v804_v27 }
 0x12e   : > { %v723_v31 = vpop.f32.mrf.mxu2  ;;  %v627_v34 = vpop.f32.mrf.mxu0 }
 0x12f   : > { %841 = vst [vmem:[%s1690_s22 + $0x58] sm:$0xff] %v825_v29  ;;  %v724_v32 = vadd.f32 %v723_v31, %v1684_v21  ;;  %v772_v33 = vpop.f32.mrf.mxu3  ;;  %v676_v37 = vpop.f32.mrf.mxu1  ;;  %v628_v39 = vadd.f32 %v627_v34, %v1681_v17 }
 0x131   : > { %v773_v36 = vadd.f32 %v772_v33, %v724_v32  ;;  %v677_v42 = vadd.f32 %v676_v37, %v628_v39 }
 0x133   : > { %v807_v38 = vmul.f32 0.088388346, %v773_v36  ;;  %v808_v48 = vmul.f32 0.088388346, %v677_v42 }
 0x135   : > { %v826_v40 = vpack.c.bf16 %v807_v38, %v806_v35 }
 0x136   : > { %v725_v41 = vpop.f32.mrf.mxu2  ;;  %v630_v45 = vpop.f32.mrf.mxu0 }
 0x137   : > { %842 = vst [vmem:[%s1690_s22 + $0x60] sm:$0xff] %v826_v40  ;;  %v726_v43 = vadd.f32 %v725_v41, %v1684_v21  ;;  %v774_v44 = vpop.f32.mrf.mxu3  ;;  %v631_v47 = vadd.f32 %v630_v45, %v1681_v17  ;;  %v679_v50 = vpop.f32.mrf.mxu1 }
 0x139   : > { %v775_v46 = vadd.f32 %v774_v44, %v726_v43  ;;  %v680_v52 = vadd.f32 %v679_v50, %v631_v47 }
 0x13b   : > { %v809_v49 = vmul.f32 0.088388346, %v775_v46  ;;  %v810_v57 = vmul.f32 0.088388346, %v680_v52 }
 0x13d   : > { %v827_v51 = vpack.c.bf16 %v809_v49, %v808_v48 }
 0x13e   : > { %v728_v53 = vpop.f32.mrf.mxu2  ;;  %v632_v56 = vpop.f32.mrf.mxu0 }
 0x13f   : > { %843 = vst [vmem:[%s1690_s22 + $0x68] sm:$0xff] %v827_v51  ;;  %v729_v54 = vadd.f32 %v728_v53, %v1684_v21  ;;  %v777_v55 = vpop.f32.mrf.mxu3  ;;  %v633_v60 = vadd.f32 %v632_v56, %v1681_v17  ;;  %v681_v62 = vpop.f32.mrf.mxu1 }
 0x141   : > { %v778_v58 = vadd.f32 %v777_v55, %v729_v54  ;;  %v682_v0 = vadd.f32 %v681_v62, %v633_v60 }
 0x143   : > { %v811_v59 = vmul.f32 0.088388346, %v778_v58  ;;  %v812_v17 = vmul.f32 0.088388346, %v682_v0 }
 0x145   : > { %v828_v61 = vpack.c.bf16 %v811_v59, %v810_v57 }
 0x146   : > { %v730_v63 = vpop.f32.mrf.mxu2 }
 0x147   : > { %844 = vst [vmem:[%s1690_s22 + $0x70] sm:$0xff] %v828_v61  ;;  %v731_v1 = vadd.f32 %v730_v63, %v1684_v21  ;;  %v779_v2 = vpop.f32.mrf.mxu3 }
 0x149   : > { %v780_v3 = vadd.f32 %v779_v2, %v731_v1 }
 0x14b   : > { %v813_v4 = vmul.f32 0.088388346, %v780_v3 }
 0x14d   : > { %v829_v5 = vpack.c.bf16 %v813_v4, %v812_v17 }
 0x14f   : > { %845 = vst [vmem:[%s1690_s22 + $0x78] sm:$0xff] %v829_v5 }
 0x150   : > { %1443 = shalt.err (!%p1440_p0)
}
 0x151   : > { %s1508_s13 = smov 128   ;;  %s1509_s26 = smov 8  }
 0x152   : > { %1249 = dma.vmem_to_hbm [thread:$0]  (%p1610_p2), %s863_s25, 2048, %s865_s29, %s847_s18, %s1508_s13, %s1508_s13, %s1509_s26  }
 0x153 PF: > { %s879_s3 = sand.u32 1, %s1482_s15   ;;  %p1263_p4 = pnand %p983_p10, %p1580_p5 }
 0x154   : > { %s880_s22 = scalar_lea.sflag [#allocation4], %s879_s3 }
 0x155   : > { %p1264_p6 = pneg %p1263_p4 }
 0x157   : > { %1477 = dma.done.wait (%p1264_p6), %s880_s22, 2048  }
 0x158   : > { %1479 = vsyncadd (%p1264_p6), %s880_s22, 4294965248  ;;  %s21_s20 = sadd.s32 1, %s1502_s20   ;;  %s1786_s15 = smov %s1486_s16 }
 0x159   : > { %p18_p8 = scmp.ge.s32.totalorder %s21_s20, 4   ;;  %s1787_s16 = smov %s1490_s17 }
 0x15a   : > { %s1788_s17 = smov %s1620_s27  ;;  %s1789_s18 = smov %s1498_s19 }
 0x15b   : > { %s1790_s19 = smov %s1792_s12  ;;  %20 = sbr.rel (!%p18_p8) target bundleno = 7 (0x7), region = 90 }
 0x160   :  { %886 = vsyncpa [#allocation3], 1 }
 0x161   :  { %888 = vsyncpa [#allocation3 + $0x1], 1 }
 0x162   :  { %889 = vsyncpa [#allocation6], 1 }
 0x163   :  { %890 = vsyncpa [#allocation4], 1 }
 0x164   :  { %892 = vsyncpa [#allocation4 + $0x1], 1 }

</bundles_post_ra>
